<compile_context>
chip_gen: v5e
topology: v5e:2x2
jax: 0.10.0
libtpu: 0.0.40
codegen_flags: <defaults>
</compile_context>

<pallas_src>
import functools
import numpy as np
import jax
import jax.numpy as jnp
from jax.experimental import pallas as pl
from jax.experimental.pallas import tpu as pltpu

LOG_STD_MAX = 2.0
LOG_STD_MIN = -20.0


def _softplus(x):
    # numerically-stable softplus; exp/log1p go to the EUP slot
    return jnp.maximum(x, 0.0) + jnp.log1p(jnp.exp(-jnp.abs(x)))


def _actor_kernel(x_ref, w1_ref, b1_ref, w2_ref, b2_ref, whead_ref, bhead_ref,
                  out_ref, *, act_limit, in_dim, act_dim, deterministic):
    """One batch tile: packed inputs -> MLP trunk -> fused head -> merged output."""
    md = w1_ref.dtype  # matmul operand dtype (f32 or bf16); accumulation is f32

    x = x_ref[...]                       # (TB, in_dim [+ act_dim])  packed slab
    xin = x[:, :in_dim]

    # ---- MLP trunk: one W1 matmul over the packed obs||goal features, ReLU x2 ----
    h = jnp.dot(xin.astype(md), w1_ref[...],
                preferred_element_type=jnp.float32) + b1_ref[...]
    h = jnp.maximum(h, 0.0)
    h = jnp.dot(h.astype(md), w2_ref[...],
                preferred_element_type=jnp.float32) + b2_ref[...]
    h = jnp.maximum(h, 0.0)

    # ---- fused mu / log_std head: one matmul, static lane split ----
    head = jnp.dot(h.astype(md), whead_ref[...],
                   preferred_element_type=jnp.float32) + bhead_ref[...]
    mu = head[:, :act_dim]
    log_std = jnp.clip(head[:, act_dim:], LOG_STD_MIN, LOG_STD_MAX)
    std = jnp.exp(log_std)

    # ---- reparameterized sample; z = (a - mu)/std == eps exactly (0 if deterministic) ----
    if deterministic:
        a = mu
        z2 = jnp.zeros_like(mu)
    else:
        eps = x[:, in_dim:in_dim + act_dim]
        a = mu + std * eps
        z2 = eps * eps

    # ---- Normal log-prob + tanh-squash correction in ONE lane reduction ----
    per_elem = (-0.5 * z2 - log_std - 0.5 * jnp.log(2.0 * jnp.pi)
                - 2.0 * (jnp.log(2.0) - a - _softplus(-2.0 * a)))

    # ---- merged output block: [ act_limit*tanh(a) | logp ] -> one writeback DMA ----
    out_ref[:, :act_dim] = act_limit * jnp.tanh(a)
    out_ref[:, act_dim:] = jnp.sum(per_elem, axis=-1, keepdims=True)


def fuse_params(params, matmul_dtype=jnp.float32):
    """One-time parameter prep: keep W1 whole, fuse mu/log_std heads, pick matmul dtype."""
    return dict(
        w1=params["w1"].astype(matmul_dtype),
        b1=params["b1"].astype(jnp.float32),
        w2=params["w2"].astype(matmul_dtype),
        b2=params["b2"].astype(jnp.float32),
        whead=jnp.concatenate([params["wmu"], params["wls"]],
                              axis=1).astype(matmul_dtype),
        bhead=jnp.concatenate([params["bmu"], params["bls"]],
                              axis=1).astype(jnp.float32),
    )


def _tpu_cores_per_chip():
    """2 TensorCores on v7x, 1 on v5e/v6e.  Used only to size the batch tile."""
    try:
        kind = jax.devices()[0].device_kind.lower()
    except Exception:
        return 1
    return 2 if "v7" in kind else 1


def _choose_batch_tile(B, cores, cap=2048):
    """Big tiles amortize the ~0.35us/step overhead; on multi-core chips make sure
    the grid has >= `cores` parallel steps so both TensorCores get work."""
    if cores <= 1 or B < 16:
        return B if B <= cap else cap            # full batch or 2048-row tiles
    tb = ((pl.cdiv(B, cores) + 7) // 8) * 8      # >= cores grid steps, 8-aligned
    return max(8, min(tb, cap))


def squashed_gaussian_actor(obs, dgoal, fused, eps=None, *, act_limit,
                            deterministic=False):
    """Pallas forward of SquashedGaussianMLPActor. Returns (pi_action, logp_pi)."""
    obs = obs.astype(jnp.float32)
    dgoal = dgoal.astype(jnp.float32)
    B = obs.shape[0]
    in_dim, hidden1 = fused["w1"].shape
    hidden2 = fused["w2"].shape[1]
    act_dim = fused["whead"].shape[1] // 2

    # Single packed input slab (few-KB XLA concat; avoids 2-3 narrow strided DMAs/step).
    parts = [obs, dgoal]
    if not deterministic:
        parts.append(eps.astype(jnp.float32))
    x = jnp.concatenate(parts, axis=-1)
    x_w = x.shape[1]
    out_w = act_dim + 1                 # merged output: [action | logp]

    cores = _tpu_cores_per_chip()
    TB = _choose_batch_tile(B, cores)
    grid = (pl.cdiv(B, TB),)

    row = lambda i: (i, 0)              # batch-tiled arrays
    res = lambda i: (0, 0)              # weights/biases: same block every step -> VMEM resident

    in_specs = [
        pl.BlockSpec((TB, x_w), row),
        pl.BlockSpec((in_dim, hidden1), res),
        pl.BlockSpec((1, hidden1), res),
        pl.BlockSpec((hidden1, hidden2), res),
        pl.BlockSpec((1, hidden2), res),
        pl.BlockSpec((hidden2, 2 * act_dim), res),
        pl.BlockSpec((1, 2 * act_dim), res),
    ]

    kernel = functools.partial(_actor_kernel,
                               act_limit=float(act_limit),
                               in_dim=int(in_dim),
                               act_dim=int(act_dim),
                               deterministic=bool(deterministic))

    out = pl.pallas_call(
        kernel,
        out_shape=jax.ShapeDtypeStruct((B, out_w), jnp.float32),
        grid=grid,
        in_specs=in_specs,
        out_specs=pl.BlockSpec((TB, out_w), row),
        compiler_params=pltpu.CompilerParams(
            dimension_semantics=("parallel",)),
    )(x, fused["w1"], fused["b1"], fused["w2"], fused["b2"],
      fused["whead"], fused["bhead"])

    return out[:, :act_dim], out[:, act_dim]


def _init_linear(key, fan_in, fan_out):
    # mirror torch.nn.Linear default init: U(-1/sqrt(fan_in), 1/sqrt(fan_in))
    kw, kb = jax.random.split(key)
    bound = 1.0 / np.sqrt(fan_in)
    w = jax.random.uniform(kw, (fan_in, fan_out), jnp.float32, -bound, bound)
    b = jax.random.uniform(kb, (1, fan_out), jnp.float32, -bound, bound)
    return w, b


def _reference(obs, dgoal, params, eps, act_limit, deterministic=False,
               matmul_dtype=jnp.float32):
    md = matmul_dtype

    def dot(a, w):
        return jnp.dot(a.astype(md), w.astype(md),
                       preferred_element_type=jnp.float32)

    x = jnp.concatenate([obs, dgoal], axis=-1)
    h = jax.nn.relu(dot(x, params["w1"]) + params["b1"])
    h = jax.nn.relu(dot(h, params["w2"]) + params["b2"])
    mu = dot(h, params["wmu"]) + params["bmu"]
    log_std = jnp.clip(dot(h, params["wls"]) + params["bls"],
                       LOG_STD_MIN, LOG_STD_MAX)
    std = jnp.exp(log_std)
    a = mu if deterministic else mu + std * eps
    z = (a - mu) / std
    logp = jnp.sum(-0.5 * z * z - log_std - 0.5 * jnp.log(2.0 * jnp.pi), axis=-1)
    logp -= jnp.sum(2.0 * (jnp.log(2.0) - a - jax.nn.softplus(-2.0 * a)), axis=-1)
    return act_limit * jnp.tanh(a), logp


if __name__ == "__main__":
    key = jax.random.PRNGKey(0)
    k1, k2, k3, k4, kd = jax.random.split(key, 5)

    # small synthetic shapes consistent with the module
    obs_dim, dgoal_dim = 12, 4
    hidden = (32, 32)
    act_dim = 4
    act_limit = 1.0
    in_dim = obs_dim + dgoal_dim

    w1, b1 = _init_linear(k1, in_dim, hidden[0])
    w2, b2 = _init_linear(k2, hidden[0], hidden[1])
    wmu, bmu = _init_linear(k3, hidden[1], act_dim)
    wls, bls = _init_linear(k4, hidden[1], act_dim)
    params = dict(w1=w1, b1=b1, w2=w2, b2=b2, wmu=wmu, bmu=bmu, wls=wls, bls=bls)

    fused_f32 = fuse_params(params, matmul_dtype=jnp.float32)
    fused_bf16 = fuse_params(params, matmul_dtype=jnp.bfloat16)  # v6e/v7x matmul path

    for B in (8, 200):  # 200 exercises multi-block / ragged tiling on 2-core chips
        k_obs, k_goal, k_eps, kd = jax.random.split(kd, 4)
        obs = jax.random.normal(k_obs, (B, obs_dim), jnp.float32)
        dgoal = jax.random.normal(k_goal, (B, dgoal_dim), jnp.float32)
        eps = jax.random.normal(k_eps, (B, act_dim), jnp.float32)

        # ---- f32 stochastic path ----
        pi_action, logp_pi = squashed_gaussian_actor(
            obs, dgoal, fused_f32, eps, act_limit=act_limit, deterministic=False)
        jax.block_until_ready((pi_action, logp_pi))
        ref_act, ref_logp = _reference(obs, dgoal, params, eps, act_limit,
                                       deterministic=False)
        assert np.allclose(np.asarray(pi_action), np.asarray(ref_act), atol=1e-5)
        assert np.allclose(np.asarray(logp_pi), np.asarray(ref_logp), atol=1e-4)

        # ---- f32 deterministic path (no eps packed into the input slab) ----
        det_act, det_logp = squashed_gaussian_actor(
            obs, dgoal, fused_f32, act_limit=act_limit, deterministic=True)
        jax.block_until_ready((det_act, det_logp))
        ref_act_d, ref_logp_d = _reference(obs, dgoal, params, eps, act_limit,
                                           deterministic=True)
        assert np.allclose(np.asarray(det_act), np.asarray(ref_act_d), atol=1e-5)
        assert np.allclose(np.asarray(det_logp), np.asarray(ref_logp_d), atol=1e-4)

        # ---- bf16-weight matmul path (accumulation + elementwise math stay f32) ----
        bf_act, bf_logp = squashed_gaussian_actor(
            obs, dgoal, fused_bf16, eps, act_limit=act_limit, deterministic=False)
        jax.block_until_ready((bf_act, bf_logp))
        ref_act_bf, ref_logp_bf = _reference(obs, dgoal, params, eps, act_limit,
                                             deterministic=False,
                                             matmul_dtype=jnp.bfloat16)
        assert np.allclose(np.asarray(bf_act), np.asarray(ref_act_bf), atol=2e-3)
        assert np.allclose(np.asarray(bf_logp), np.asarray(ref_logp_bf), atol=5e-3)

    print("KERNEL_OK")
</pallas_src>

<mosaic_0001>
module attributes {stable_mosaic.version = 11 : i64} {
  func.func @_actor_kernel(%arg0: i32, %arg1: memref<8x20xf32, #tpu.memory_space<vmem>>, %arg2: memref<16x32xf32, #tpu.memory_space<vmem>>, %arg3: memref<1x32xf32, #tpu.memory_space<vmem>>, %arg4: memref<32x32xf32, #tpu.memory_space<vmem>>, %arg5: memref<1x32xf32, #tpu.memory_space<vmem>>, %arg6: memref<32x8xf32, #tpu.memory_space<vmem>>, %arg7: memref<1x8xf32, #tpu.memory_space<vmem>>, %arg8: memref<8x5xf32, #tpu.memory_space<vmem>>) attributes {dimension_semantics = [#tpu.dimension_semantics<parallel>], iteration_bounds = array<i64: 1>, scalar_prefetch = 0 : i64, scratch_operands = 0 : i64, tpu.core_type = #tpu.core_type<tc>, window_params = [{transform_indices = @transform_0, window_bounds = array<i64: 8, 20>}, {pipeline_mode = #tpu.pipeline_mode<synchronous>, transform_indices = @transform_1, window_bounds = array<i64: 16, 32>}, {pipeline_mode = #tpu.pipeline_mode<synchronous>, transform_indices = @transform_2, window_bounds = array<i64: 1, 32>}, {pipeline_mode = #tpu.pipeline_mode<synchronous>, transform_indices = @transform_3, window_bounds = array<i64: 32, 32>}, {pipeline_mode = #tpu.pipeline_mode<synchronous>, transform_indices = @transform_4, window_bounds = array<i64: 1, 32>}, {pipeline_mode = #tpu.pipeline_mode<synchronous>, transform_indices = @transform_5, window_bounds = array<i64: 32, 8>}, {pipeline_mode = #tpu.pipeline_mode<synchronous>, transform_indices = @transform_6, window_bounds = array<i64: 1, 8>}, {transform_indices = @transform_7, window_bounds = array<i64: 8, 5>}]} {
    %c0 = arith.constant 0 : index
    %c0_0 = arith.constant 0 : index
    %0 = vector.load %arg1[%c0, %c0_0] : memref<8x20xf32, #tpu.memory_space<vmem>>, vector<8x20xf32>
    %1 = vector.extract_strided_slice %0 {offsets = [0, 0], sizes = [8, 16], strides = [1, 1]} : vector<8x20xf32> to vector<8x16xf32>
    %c0_1 = arith.constant 0 : index
    %c0_2 = arith.constant 0 : index
    %2 = vector.load %arg2[%c0_1, %c0_2] : memref<16x32xf32, #tpu.memory_space<vmem>>, vector<16x32xf32>
    %cst = arith.constant dense<0.000000e+00> : vector<8x32xf32>
    %3 = tpu.matmul %1, %2, %cst {dimension_numbers = #tpu.dot_dimension_numbers<[1], [0], [0], [1], [0, 0, 1, 1], [], []>} : vector<8x16xf32>, vector<16x32xf32>, vector<8x32xf32> -> vector<8x32xf32>
    %c0_3 = arith.constant 0 : index
    %c0_4 = arith.constant 0 : index
    %4 = vector.load %arg3[%c0_3, %c0_4] : memref<1x32xf32, #tpu.memory_space<vmem>>, vector<1x32xf32>
    %5 = vector.broadcast %4 : vector<1x32xf32> to vector<8x32xf32>
    %6 = arith.addf %3, %5 : vector<8x32xf32>
    %cst_5 = arith.constant 0.000000e+00 : f32
    %7 = vector.broadcast %cst_5 : f32 to vector<8x32xf32>
    %8 = arith.maximumf %6, %7 : vector<8x32xf32>
    %c0_6 = arith.constant 0 : index
    %c0_7 = arith.constant 0 : index
    %9 = vector.load %arg4[%c0_6, %c0_7] : memref<32x32xf32, #tpu.memory_space<vmem>>, vector<32x32xf32>
    %cst_8 = arith.constant dense<0.000000e+00> : vector<8x32xf32>
    %10 = tpu.matmul %8, %9, %cst_8 {dimension_numbers = #tpu.dot_dimension_numbers<[1], [0], [0], [1], [0, 0, 1, 1], [], []>} : vector<8x32xf32>, vector<32x32xf32>, vector<8x32xf32> -> vector<8x32xf32>
    %c0_9 = arith.constant 0 : index
    %c0_10 = arith.constant 0 : index
    %11 = vector.load %arg5[%c0_9, %c0_10] : memref<1x32xf32, #tpu.memory_space<vmem>>, vector<1x32xf32>
    %12 = vector.broadcast %11 : vector<1x32xf32> to vector<8x32xf32>
    %13 = arith.addf %10, %12 : vector<8x32xf32>
    %cst_11 = arith.constant 0.000000e+00 : f32
    %14 = vector.broadcast %cst_11 : f32 to vector<8x32xf32>
    %15 = arith.maximumf %13, %14 : vector<8x32xf32>
    %c0_12 = arith.constant 0 : index
    %c0_13 = arith.constant 0 : index
    %16 = vector.load %arg6[%c0_12, %c0_13] : memref<32x8xf32, #tpu.memory_space<vmem>>, vector<32x8xf32>
    %cst_14 = arith.constant dense<0.000000e+00> : vector<8x8xf32>
    %17 = tpu.matmul %15, %16, %cst_14 {dimension_numbers = #tpu.dot_dimension_numbers<[1], [0], [0], [1], [0, 0, 1, 1], [], []>} : vector<8x32xf32>, vector<32x8xf32>, vector<8x8xf32> -> vector<8x8xf32>
    %c0_15 = arith.constant 0 : index
    %c0_16 = arith.constant 0 : index
    %18 = vector.load %arg7[%c0_15, %c0_16] : memref<1x8xf32, #tpu.memory_space<vmem>>, vector<1x8xf32>
    %19 = vector.broadcast %18 : vector<1x8xf32> to vector<8x8xf32>
    %20 = arith.addf %17, %19 : vector<8x8xf32>
    %21 = vector.extract_strided_slice %20 {offsets = [0, 0], sizes = [8, 4], strides = [1, 1]} : vector<8x8xf32> to vector<8x4xf32>
    %22 = vector.extract_strided_slice %20 {offsets = [0, 4], sizes = [8, 4], strides = [1, 1]} : vector<8x8xf32> to vector<8x4xf32>
    %cst_17 = arith.constant -2.000000e+01 : f32
    %cst_18 = arith.constant 2.000000e+00 : f32
    %23 = vector.broadcast %cst_17 : f32 to vector<8x4xf32>
    %24 = arith.maximumf %23, %22 : vector<8x4xf32>
    %25 = vector.broadcast %cst_18 : f32 to vector<8x4xf32>
    %26 = arith.minimumf %25, %24 : vector<8x4xf32>
    %27 = math.exp %26 : vector<8x4xf32>
    %28 = vector.extract_strided_slice %0 {offsets = [0, 16], sizes = [8, 4], strides = [1, 1]} : vector<8x20xf32> to vector<8x4xf32>
    %29 = arith.mulf %27, %28 : vector<8x4xf32>
    %30 = arith.addf %21, %29 : vector<8x4xf32>
    %31 = arith.mulf %28, %28 : vector<8x4xf32>
    %cst_19 = arith.constant -5.000000e-01 : f32
    %32 = vector.broadcast %cst_19 : f32 to vector<8x4xf32>
    %33 = arith.mulf %32, %31 : vector<8x4xf32>
    %34 = arith.subf %33, %26 : vector<8x4xf32>
    %cst_20 = arith.constant 6.28318548 : f32
    %35 = math.log %cst_20 : f32
    %cst_21 = arith.constant 5.000000e-01 : f32
    %36 = arith.mulf %cst_21, %35 : f32
    %37 = vector.broadcast %36 : f32 to vector<8x4xf32>
    %38 = arith.subf %34, %37 : vector<8x4xf32>
    %cst_22 = arith.constant 2.000000e+00 : f32
    %39 = math.log %cst_22 : f32
    %40 = vector.broadcast %39 : f32 to vector<8x4xf32>
    %41 = arith.subf %40, %30 : vector<8x4xf32>
    %cst_23 = arith.constant -2.000000e+00 : f32
    %42 = vector.broadcast %cst_23 : f32 to vector<8x4xf32>
    %43 = arith.mulf %42, %30 : vector<8x4xf32>
    %cst_24 = arith.constant 0.000000e+00 : f32
    %44 = vector.broadcast %cst_24 : f32 to vector<8x4xf32>
    %45 = arith.maximumf %43, %44 : vector<8x4xf32>
    %46 = math.absf %43 : vector<8x4xf32>
    %cst_25 = arith.constant 0.000000e+00 : f32
    %47 = vector.broadcast %cst_25 : f32 to vector<8x4xf32>
    %48 = arith.subf %47, %46 : vector<8x4xf32>
    %49 = math.exp %48 : vector<8x4xf32>
    %50 = math.log1p %49 : vector<8x4xf32>
    %51 = arith.addf %45, %50 : vector<8x4xf32>
    %52 = arith.subf %41, %51 : vector<8x4xf32>
    %cst_26 = arith.constant 2.000000e+00 : f32
    %53 = vector.broadcast %cst_26 : f32 to vector<8x4xf32>
    %54 = arith.mulf %53, %52 : vector<8x4xf32>
    %55 = arith.subf %38, %54 : vector<8x4xf32>
    %56 = math.tanh %30 : vector<8x4xf32>
    %cst_27 = arith.constant 1.000000e+00 : f32
    %57 = vector.broadcast %cst_27 : f32 to vector<8x4xf32>
    %58 = arith.mulf %57, %56 : vector<8x4xf32>
    %c0_28 = arith.constant 0 : index
    %c0_29 = arith.constant 0 : index
    %59 = vector.load %arg8[%c0_28, %c0_29] : memref<8x5xf32, #tpu.memory_space<vmem>>, vector<8x4xf32>
    tpu.vector_store %arg8[%c0_28, %c0_29], %58 {strides = array<i32>} : memref<8x5xf32, #tpu.memory_space<vmem>>, vector<8x4xf32>,
    %cst_30 = arith.constant dense<0.000000e+00> : vector<8xf32>
    %60 = vector.multi_reduction <add>, %55, %cst_30 [1] : vector<8x4xf32> to vector<8xf32>
    %61 = vector.shape_cast %60 : vector<8xf32> to vector<8x1xf32>
    %c0_31 = arith.constant 0 : index
    %c4 = arith.constant 4 : index
    %62 = vector.load %arg8[%c0_31, %c4] : memref<8x5xf32, #tpu.memory_space<vmem>>, vector<8x1xf32>
    tpu.vector_store %arg8[%c0_31, %c4], %61 {strides = array<i32>} : memref<8x5xf32, #tpu.memory_space<vmem>>, vector<8x1xf32>,
    return
  }
  func.func @transform_0(%arg0: i32) -> (i32, i32) {
    %c0_i32 = arith.constant 0 : i32
    %c0_i32_0 = arith.constant 0 : i32
    return %arg0, %c0_i32 : i32, i32
  }
  func.func @transform_1(%arg0: i32) -> (i32, i32) {
    %c0_i32 = arith.constant 0 : i32
    %c0_i32_0 = arith.constant 0 : i32
    %c0_i32_1 = arith.constant 0 : i32
    return %c0_i32, %c0_i32_0 : i32, i32
  }
  func.func @transform_2(%arg0: i32) -> (i32, i32) {
    %c0_i32 = arith.constant 0 : i32
    %c0_i32_0 = arith.constant 0 : i32
    %c0_i32_1 = arith.constant 0 : i32
    return %c0_i32, %c0_i32_0 : i32, i32
  }
  func.func @transform_3(%arg0: i32) -> (i32, i32) {
    %c0_i32 = arith.constant 0 : i32
    %c0_i32_0 = arith.constant 0 : i32
    %c0_i32_1 = arith.constant 0 : i32
    return %c0_i32, %c0_i32_0 : i32, i32
  }
  func.func @transform_4(%arg0: i32) -> (i32, i32) {
    %c0_i32 = arith.constant 0 : i32
    %c0_i32_0 = arith.constant 0 : i32
    %c0_i32_1 = arith.constant 0 : i32
    return %c0_i32, %c0_i32_0 : i32, i32
  }
  func.func @transform_5(%arg0: i32) -> (i32, i32) {
    %c0_i32 = arith.constant 0 : i32
    %c0_i32_0 = arith.constant 0 : i32
    %c0_i32_1 = arith.constant 0 : i32
    return %c0_i32, %c0_i32_0 : i32, i32
  }
  func.func @transform_6(%arg0: i32) -> (i32, i32) {
    %c0_i32 = arith.constant 0 : i32
    %c0_i32_0 = arith.constant 0 : i32
    %c0_i32_1 = arith.constant 0 : i32
    return %c0_i32, %c0_i32_0 : i32, i32
  }
  func.func @transform_7(%arg0: i32) -> (i32, i32) {
    %c0_i32 = arith.constant 0 : i32
    %c0_i32_0 = arith.constant 0 : i32
    return %arg0, %c0_i32 : i32, i32
  }
}

</mosaic_0001>

<bundles_post_ra>
// kernel: tpu_custom_call.1
= control target key start
LH: loop header
LB: loop body
LE: loop exit
PB: predicated region body
PF: predicated region fallthrough
CT: control target
= control target key end

     0   :  { %12 = vsyncpa [#allocation3], 0  ;;  %s388_s0 = inlined_call_operand.vmem [shape: f32[8,20], index: 0, kind: input, shape index: {}]   ;;  %s389_s1 = inlined_call_operand.hbm [shape: f32[16,32], index: 1, kind: input, shape index: {}]   ;;  %s390_s2 = inlined_call_operand.vmem [shape: f32[1,32], index: 2, kind: input, shape index: {}]   ;;  %s391_s3 = inlined_call_operand.vmem [shape: f32[32,32], index: 3, kind: input, shape index: {}]   ;;  %s392_s4 = inlined_call_operand.vmem [shape: f32[1,32], index: 4, kind: input, shape index: {}]   ;;  %s393_s5 = inlined_call_operand.vmem [shape: f32[32,8], index: 5, kind: input, shape index: {}]   ;;  %s394_s6 = inlined_call_operand.vmem [shape: f32[1,8], index: 6, kind: input, shape index: {}]   ;;  %s395_s7 = inlined_call_operand.hbm [shape: f32[8,5], index: 7, kind: output, shape index: {}]  }
   0x1   :  { %13 = vsyncpa [#allocation4], 0  ;;  %s20_s26 = sshll.u32 %s389_s1, 4  ;;  %s289_s27 = smov [#allocation2]   ;;  %s21_s26 = int_to_ptr.hbm [resolvable:$true] %s20_s26 }
   0x2   :  { %s22_s28 = sshll.u32 %s289_s27, 4  ;;  %s290_s29 = smov 128   ;;  %s23_s28 = int_to_ptr.vmem [resolvable:$true] %s22_s28 }
   0x3   :  { %s291_s30 = smov 8  }
   0x4   :  { %28 = dma.hbm_to_vmem [thread:$0]  %s21_s26, 256, %s23_s28, [#allocation3], %s290_s29, %s290_s29, %s291_s30  }
   0x5   :  { %285 = dma.done.wait [#allocation3], 256  }
   0x6   :  { %286 = vsyncadd [#allocation3], 4294967040  ;;  %v45_v0 = vld [vmem:[#allocation2 + $0x8] sm:$0xff]  ;;  %v44_v1 = vld [vmem:[#allocation2] sm:$0xff]  ;;  %vm50_vm0 = vcmask 130048   ;;  %vm83_vm1 = vcmask 261120  }
   0x7   :  { %68 = vmatpush.msra.mxu0 %v45_v0  ;;  %v344_v2 = vld [vmem:[%s388_s0] sm:$0xff]  ;;  %v78_v3 = vld [vmem:[%s391_s3 + $0x18] sm:$0xff]  ;;  %v77_v4 = vld [vmem:[%s391_s3 + $0x10] sm:$0xff]  ;;  %s292_s20 = smov 116   ;;  %s293_s29 = smov 12   ;;  %vm185_vm2 = vcmask 31744  }
   0x8   :  { %99 = vmatpush.msra.mxu1 %v78_v3  ;;  %v76_v5 = vld [vmem:[%s391_s3 + $0x8] sm:$0xff]  ;;  %v75_v6 = vld [vmem:[%s391_s3] sm:$0xff]  ;;  %v111_v7 = vld [vmem:[%s393_s5 + $0x18] sm:$0xff]  ;;  %143 = vrot.lane.b32.xlu0 %v344_v2, %s292_s20  ;;  %v152_v49 = vmul.f32 %v344_v2, %v344_v2  ;;  %s297_s30 = smov [#allocation5]   ;;  %s203_s1 = sshll.u32 %s395_s7, 4  ;;  %vm194_vm4 = vcmask 39968   ;;  %s204_s1 = int_to_ptr.hbm [resolvable:$true] %s203_s1 }
   0x9   :  { %69 = vmatpush.msra.mxu0 %v44_v1  ;;  %131 = vmatpush.msra.mxu2 %v111_v7  ;;  %v226_v8 = vld [vmem:[%s390_s2] ss:$0 sm:$0xff]  ;;  %v110_v12 = vld [vmem:[%s393_s5 + $0x10] sm:$0xff]  ;;  %v109_v13 = vld [vmem:[%s393_s5 + $0x8] sm:$0xff]  ;;  %s201_s8 = sshll.u32 %s297_s30, 4  ;;  %s202_s8 = int_to_ptr.vmem [resolvable:$true] %s201_s8 }
   0xa   :  { %213 = vmatmul.msk.f32.vlgmr.msra.gmra.mxu0 %vm50_vm0, %v344_v2  ;;  %100 = vmatpush.msra.mxu1 %v77_v4  ;;  %v108_v14 = vld [vmem:[%s393_s5] sm:$0xff]  ;;  %s295_s5 = smov 16   ;;  %v153_v50 = vmul.f32 -0.5, %v152_v49 }
   0xb   :  { %132 = vmatpush.msra.mxu2 %v110_v12  ;;  %v227_v15 = vld [vmem:[%s392_s4] ss:$0 sm:$0xff]  ;;  %s294_s4 = smov 124  }
   0xc   :  { %101 = vmatpush.msra.mxu1 %v76_v5  ;;  %v228_v19 = vld [vmem:[%s394_s6] ss:$0 sm:$0xff]  ;;  %s296_s6 = smov 112  }
   0xd   :  { %133 = vmatpush.msra.mxu2 %v109_v13 }
   0xe   :  { %102 = vmatpush.msra.mxu1 %v75_v6 }
   0xf   :  { %134 = vmatpush.msra.mxu2 %v108_v14 }
  0x7a   :  { %v144_v25 = vpop.permute.xlu0 %143 }
  0x87   :  { %v71_v9 = vpop.f32.mrf.mxu0 }
  0x88   :  { %v72_v10 = vadd.f32 %v226_v8, %v71_v9 }
  0x8a   :  { %v74_v11 = vmax.f32 %v72_v10, 0.0 }
  0x8c   :  { %214 = vmatmul.msk.f32.vlgmr.msra.gmra.mxu1 %vm83_vm1, %v74_v11 }
 0x109   :  { %v104_v16 = vpop.f32.mrf.mxu1 }
 0x10a   :  { %v105_v17 = vadd.f32 %v227_v15, %v104_v16 }
 0x10c   :  { %v107_v18 = vmax.f32 %v105_v17, 0.0 }
 0x10e   :  { %215 = vmatmul.msk.f32.vlgmr.msra.gmra.mxu2 %vm83_vm1, %v107_v18 }
 0x191   :  { %v136_v20 = vpop.f32.mrf.mxu2 }
 0x192   :  { %v137_v21 = vadd.f32 %v228_v19, %v136_v20 }
 0x194   :  { %v139_v22 = vmax.f32 %v137_v21, -20.0 }
 0x196   :  { %v140_v23 = vmin.f32 %v139_v22, 2.0 }
 0x198   :  { %155 = vrot.lane.b32.xlu1 %v140_v23, %s293_s29  ;;  %v141_v24 = vmul.f32 1.442695, %v140_v23 }
 0x19a   :  { %229 = vpow2.f32 %v141_v24 }
 0x1a0   :  { %v230_v26 = vpop.eup %229 }
 0x1a1   :  { %v146_v27 = vmul.f32 %v230_v26, %v144_v25 }
 0x1a3   :  { %148 = vrot.lane.b32.xlu0 %v146_v27, %s294_s4 }
 0x20a   :  { %v156_v51 = vpop.permute.xlu1 %155 }
 0x20b   :  { %v158_v52 = vsub.f32 %v153_v50, %v156_v51 }
 0x20d   :  { %v216_v53 = vadd.f32 -0.9189385, %v158_v52 }
 0x215   :  { %v149_v28 = vpop.permute.xlu0 %148 }
 0x216   :  { %v151_v29 = vadd.f32 %v149_v28, %v137_v21 }
 0x218   :  { %v161_v30 = vmul.f32 -2.0, %v151_v29  ;;  %231 = vtanh.f32 %v151_v29  ;;  %v160_v45 = vsub.f32 0.6931472, %v151_v29 }
 0x21a   :  { %v163_v31 = vand.u32 2147483647, %v161_v30  ;;  %v162_v43 = vmax.f32 %v161_v30, 0.0 }
 0x21c   :  { %v164_v32 = vsub.f32 0.0, %v163_v31 }
 0x21e   :  { %v232_v33 = vpop.eup %231  ;;  %v165_v34 = vmul.f32 1.442695, %v164_v32 }
 0x21f   :  { %186 = vst.msk [vmem:[#allocation5] sm:$0xff] %vm185_vm2, %v232_v33 }
 0x220   :  { %233 = vpow2.f32 %v165_v34 }
 0x226   :  { %v234_v35 = vpop.eup %233 }
 0x227   :  { %v167_v36 = vadd.f32 1.0, %v234_v35  ;;  %v170_v37 = vmul.f32 -0.5, %v234_v35  ;;  %v173_v39 = vand.u32 2147483647, %v234_v35 }
 0x229   :  { %235 = vlog2.f32 %v167_v36  ;;  %v171_v38 = vadd.f32 1.0, %v170_v37  ;;  %vm174_vm3 = vcmp.lt.f32.partialorder %v173_v39, 0.0004427343 }
 0x22b   :  { %v172_v42 = vmul.f32 %v234_v35, %v171_v38 }
 0x22f   :  { %v236_v40 = vpop.eup %235 }
 0x230   :  { %v169_v41 = vmul.f32 0.6931472, %v236_v40 }
 0x232   :  { %v175_v44 = vsel %vm174_vm3, %v172_v42, %v169_v41 }
 0x233   :  { %v176_v46 = vadd.f32 %v175_v44, %v162_v43 }
 0x235   :  { %v177_v47 = vsub.f32 %v160_v45, %v176_v46 }
 0x237   :  { %v178_v48 = vmul.f32 2.0, %v177_v47 }
 0x239   :  { %180 = vrot.lane.b32.xlu1 %v178_v48, %s295_s5 }
 0x2ab   :  { %v181_v54 = vpop.permute.xlu1 %180 }
 0x2ac   :  { %v183_v55 = vsub.f32 %v216_v53, %v181_v54 }
 0x2ae   :  { %188 = vrot.lane.b32.xlu2 %v183_v55, %s296_s6 }
 0x308   :  { %v189_v56 = vpop.permute.xlu2 %188 }
 0x309   :  { %v191_v57 = vsel %vm185_vm2, %v189_v56, 0.0 }
 0x30a   :  { %192 = vadd.xlane.f32.xlu2 %v191_v57 }
 0x37d   :  { %v193_v58 = vpop.xlane.xlu2 %192 }
 0x37e   :  { %195 = vst.msk [vmem:[#allocation5] sm:$0xff] %vm194_vm4, %v193_v58 }
 0x37f   :  { %206 = dma.vmem_to_hbm [thread:$0]  %s202_s8, 128, %s204_s1, [#allocation4]  }
 0x380   :  { %287 = dma.done.wait [#allocation4], 128  }
 0x381   :  { %288 = vsyncadd [#allocation4], 4294967168 }
 0x382   :  { %211 = vsyncpa [#allocation3], 1 }
 0x383   :  { %212 = vsyncpa [#allocation4], 1 }

</bundles_post_ra>
